<compile_context>
chip_gen: v7x
topology: tpu7x:2x2x1
jax: 0.10.0
libtpu: 0.0.40
codegen_flags: <defaults>
</compile_context>

<pallas_src>
import jax
import jax.numpy as jnp
from jax.experimental import pallas as pl
from jax.experimental.pallas import tpu as pltpu


def _round_up(n, m):
    return ((n + m - 1) // m) * m


def _make_encoder_kernel(z_dim):
    def kernel(x_ref, w1_ref, b1_ref, w2_ref, b2_ref, w3_ref, b3_ref, out_ref):
        x = x_ref[...]                                                  # (TB, 128) bf16

        # Linear(128, 512) + LeakyReLU(0.2)   (bf16 MXU, fp32 accumulate)
        h = jnp.dot(x, w1_ref[...], preferred_element_type=jnp.float32) + b1_ref[...]
        h = jnp.maximum(h, 0.2 * h).astype(jnp.bfloat16)                # slope < 1 -> max form

        # Linear(512, 512) + LeakyReLU(0.2)
        h = jnp.dot(h, w2_ref[...], preferred_element_type=jnp.float32) + b2_ref[...]
        h = jnp.maximum(h, 0.2 * h).astype(jnp.bfloat16)

        # Linear(512, 128 padded)  -- lanes [0, z) = mu head, [z, 2z) = sigma head
        p = jnp.dot(h, w3_ref[...], preferred_element_type=jnp.float32) + b3_ref[...]

        # softplus(x) = log(1 + exp(x)) computed stably via logaddexp (EUP),
        # applied to all lanes; lane-index select keeps the mu lanes raw.  No
        # in-kernel lane slicing -> every store is a full-width, unmasked vst.
        sp = jnp.logaddexp(p, 0.0) + 1e-7
        col = jax.lax.broadcasted_iota(jnp.int32, p.shape, 1)
        out_ref[...] = jnp.where(col < z_dim, p, sp)

    return kernel


def prepare_encoder_params(params, z_dim):
    """One-time preprocessing: cast weights to bf16, biases to fp32 row vectors,
    and zero-pad the last layer to a lane-dense 128-wide output head.

    Do this once at init / param-update time, NOT per forward call.
    """
    w1, b1, w2, b2, w3, b3 = params
    H2 = w2.shape[1]
    OUT = 2 * z_dim
    OUT_PAD = _round_up(max(OUT, 128), 128)

    w3p = jnp.zeros((H2, OUT_PAD), jnp.float32).at[:, :OUT].set(w3.astype(jnp.float32))
    b3p = jnp.zeros((1, OUT_PAD), jnp.float32).at[:, :OUT].set(
        b3.reshape(1, -1).astype(jnp.float32))

    return (
        w1.astype(jnp.bfloat16),
        b1.reshape(1, -1).astype(jnp.float32),
        w2.astype(jnp.bfloat16),
        b2.reshape(1, -1).astype(jnp.float32),
        w3p.astype(jnp.bfloat16),
        b3p,
        OUT_PAD,
    )


def encoder_forward(x, prepared, z_dim, *, batch_tile=1024):
    """x: any shape with leading batch dim; flattened to (B, 128).

    `prepared` comes from prepare_encoder_params().
    Returns (mu, sigma) of the Independent(Normal(mu, sigma), 1) distribution.
    """
    B = x.shape[0]
    x2d = x.reshape(B, -1)
    in_dim = x2d.shape[1]
    assert in_dim == 128, f"Encoder expects 128 flattened features, got {in_dim}"

    w1b, b1f, w2b, b2f, w3b, b3f, OUT_PAD = prepared
    H1, H2 = w1b.shape[1], w2b.shape[1]
    OUT = 2 * z_dim

    x_bf = x2d.astype(jnp.bfloat16)

    # Batch tiling: big tiles (default 1024 rows) to keep the weight-stationary
    # MXU pipeline fed; TB is a multiple of 16 for bf16 sublane packing.
    B16 = _round_up(B, 16)
    TB = min(batch_tile, B16)
    # v7x megacore: keep at least 2 grid steps whenever there is enough work
    # to split, so dimension_semantics=("parallel",) can shard across both TCs.
    if B16 > 16 and B16 // TB < 2:
        TB = max(16, _round_up(pl.cdiv(B16, 2), 16))

    B_pad = pl.cdiv(B, TB) * TB
    if B_pad != B:
        x_bf = jnp.pad(x_bf, ((0, B_pad - B), (0, 0)))

    grid = (B_pad // TB,)
    full = lambda i: (0, 0)   # whole-array blocks for weights / biases (resident)

    out = pl.pallas_call(
        _make_encoder_kernel(z_dim),
        out_shape=jax.ShapeDtypeStruct((B_pad, OUT_PAD), jnp.float32),
        grid_spec=pltpu.PrefetchScalarGridSpec(
            num_scalar_prefetch=0,
            grid=grid,
            in_specs=[
                pl.BlockSpec((TB, in_dim), lambda i: (i, 0)),   # x tile
                pl.BlockSpec((in_dim, H1), full),               # W1
                pl.BlockSpec((1, H1), full),                    # b1
                pl.BlockSpec((H1, H2), full),                   # W2
                pl.BlockSpec((1, H2), full),                    # b2
                pl.BlockSpec((H2, OUT_PAD), full),              # W3 (padded)
                pl.BlockSpec((1, OUT_PAD), full),               # b3 (padded)
            ],
            out_specs=pl.BlockSpec((TB, OUT_PAD), lambda i: (i, 0)),
        ),
        compiler_params=pltpu.CompilerParams(
            dimension_semantics=("parallel",)),
    )(x_bf, w1b, b1f, w2b, b2f, w3b, b3f)

    mu = out[:B, :z_dim]
    sigma = out[:B, z_dim:OUT]
    return mu, sigma


def init_encoder_params(key, z_dim):
    """Deterministic synthetic parameters (shapes match the torch module).

    Stored as (in_features, out_features) so the kernel can do x @ W + b.
    """
    k1, k2, k3 = jax.random.split(key, 3)
    scale = 0.05
    w1 = scale * jax.random.normal(k1, (128, 512), jnp.float32)
    b1 = jnp.zeros((1, 512), jnp.float32)
    w2 = scale * jax.random.normal(k2, (512, 512), jnp.float32)
    b2 = jnp.zeros((1, 512), jnp.float32)
    w3 = scale * jax.random.normal(k3, (512, 2 * z_dim), jnp.float32)
    b3 = jnp.zeros((1, 2 * z_dim), jnp.float32)
    return (w1, b1, w2, b2, w3, b3)


def _reference_forward(x, params, z_dim):
    """Plain-JAX fp32 reference of the torch forward (for sanity checking)."""
    w1, b1, w2, b2, w3, b3 = params
    x2d = x.reshape(x.shape[0], -1)
    h = x2d @ w1 + b1
    h = jnp.where(h > 0, h, 0.2 * h)
    h = h @ w2 + b2
    h = jnp.where(h > 0, h, 0.2 * h)
    p = h @ w3 + b3
    mu = p[:, :z_dim]
    sigma = jax.nn.softplus(p[:, z_dim:]) + 1e-7
    return mu, sigma


if __name__ == "__main__":
    z_dim = 16
    B = 8   # small demo batch; kernel pads/tiles arbitrary B

    key = jax.random.PRNGKey(0)
    kx, kp = jax.random.split(key)
    # 128 flattened input features (e.g. a (B, 128) feature batch)
    x = jax.random.normal(kx, (B, 128), jnp.float32)
    params = init_encoder_params(kp, z_dim)
    prepared = prepare_encoder_params(params, z_dim)   # one-time weight prep

    mu, sigma = encoder_forward(x, prepared, z_dim)
    jax.block_until_ready((mu, sigma))

    mu_ref, sigma_ref = _reference_forward(x, params, z_dim)
    # bf16 matmuls with fp32 accumulation -> loosened tolerances vs fp32 reference
    assert jnp.allclose(mu, mu_ref, atol=5e-2, rtol=5e-2), "mu mismatch"
    assert jnp.allclose(sigma, sigma_ref, atol=5e-2, rtol=5e-2), "sigma mismatch"
    assert bool(jnp.all(sigma > 0))

    print("KERNEL_OK")
</pallas_src>

<mosaic_0001>
module attributes {stable_mosaic.version = 11 : i64} {
  func.func @kernel(%arg0: i32, %arg1: memref<16x128xbf16, #tpu.memory_space<vmem>>, %arg2: memref<128x512xbf16, #tpu.memory_space<vmem>>, %arg3: memref<1x512xf32, #tpu.memory_space<vmem>>, %arg4: memref<512x512xbf16, #tpu.memory_space<vmem>>, %arg5: memref<1x512xf32, #tpu.memory_space<vmem>>, %arg6: memref<512x128xbf16, #tpu.memory_space<vmem>>, %arg7: memref<1x128xf32, #tpu.memory_space<vmem>>, %arg8: memref<16x128xf32, #tpu.memory_space<vmem>>) attributes {dimension_semantics = [#tpu.dimension_semantics<parallel>], iteration_bounds = array<i64: 1>, scalar_prefetch = 0 : i64, scratch_operands = 0 : i64, tpu.core_type = #tpu.core_type<tc>, window_params = [{transform_indices = @transform_0, window_bounds = array<i64: 16, 128>}, {pipeline_mode = #tpu.pipeline_mode<synchronous>, transform_indices = @transform_1, window_bounds = array<i64: 128, 512>}, {pipeline_mode = #tpu.pipeline_mode<synchronous>, transform_indices = @transform_2, window_bounds = array<i64: 1, 512>}, {pipeline_mode = #tpu.pipeline_mode<synchronous>, transform_indices = @transform_3, window_bounds = array<i64: 512, 512>}, {pipeline_mode = #tpu.pipeline_mode<synchronous>, transform_indices = @transform_4, window_bounds = array<i64: 1, 512>}, {pipeline_mode = #tpu.pipeline_mode<synchronous>, transform_indices = @transform_5, window_bounds = array<i64: 512, 128>}, {pipeline_mode = #tpu.pipeline_mode<synchronous>, transform_indices = @transform_6, window_bounds = array<i64: 1, 128>}, {transform_indices = @transform_7, window_bounds = array<i64: 16, 128>}]} {
    %c0 = arith.constant 0 : index
    %c0_0 = arith.constant 0 : index
    %0 = vector.load %arg1[%c0, %c0_0] : memref<16x128xbf16, #tpu.memory_space<vmem>>, vector<16x128xbf16>
    %c0_1 = arith.constant 0 : index
    %c0_2 = arith.constant 0 : index
    %1 = vector.load %arg2[%c0_1, %c0_2] : memref<128x512xbf16, #tpu.memory_space<vmem>>, vector<128x512xbf16>
    %cst = arith.constant dense<0.000000e+00> : vector<16x512xf32>
    %2 = tpu.matmul %0, %1, %cst {dimension_numbers = #tpu.dot_dimension_numbers<[1], [0], [0], [1], [0, 0, 1, 1], [], []>} : vector<16x128xbf16>, vector<128x512xbf16>, vector<16x512xf32> -> vector<16x512xf32>
    %c0_3 = arith.constant 0 : index
    %c0_4 = arith.constant 0 : index
    %3 = vector.load %arg3[%c0_3, %c0_4] : memref<1x512xf32, #tpu.memory_space<vmem>>, vector<1x512xf32>
    %4 = vector.broadcast %3 : vector<1x512xf32> to vector<16x512xf32>
    %5 = arith.addf %2, %4 : vector<16x512xf32>
    %cst_5 = arith.constant 2.000000e-01 : f32
    %6 = vector.broadcast %cst_5 : f32 to vector<16x512xf32>
    %7 = arith.mulf %6, %5 : vector<16x512xf32>
    %8 = arith.maximumf %5, %7 : vector<16x512xf32>
    %9 = arith.truncf %8 : vector<16x512xf32> to vector<16x512xbf16>
    %c0_6 = arith.constant 0 : index
    %c0_7 = arith.constant 0 : index
    %10 = vector.load %arg4[%c0_6, %c0_7] : memref<512x512xbf16, #tpu.memory_space<vmem>>, vector<512x512xbf16>
    %cst_8 = arith.constant dense<0.000000e+00> : vector<16x512xf32>
    %11 = tpu.matmul %9, %10, %cst_8 {dimension_numbers = #tpu.dot_dimension_numbers<[1], [0], [0], [1], [0, 0, 1, 1], [], []>} : vector<16x512xbf16>, vector<512x512xbf16>, vector<16x512xf32> -> vector<16x512xf32>
    %c0_9 = arith.constant 0 : index
    %c0_10 = arith.constant 0 : index
    %12 = vector.load %arg5[%c0_9, %c0_10] : memref<1x512xf32, #tpu.memory_space<vmem>>, vector<1x512xf32>
    %13 = vector.broadcast %12 : vector<1x512xf32> to vector<16x512xf32>
    %14 = arith.addf %11, %13 : vector<16x512xf32>
    %cst_11 = arith.constant 2.000000e-01 : f32
    %15 = vector.broadcast %cst_11 : f32 to vector<16x512xf32>
    %16 = arith.mulf %15, %14 : vector<16x512xf32>
    %17 = arith.maximumf %14, %16 : vector<16x512xf32>
    %18 = arith.truncf %17 : vector<16x512xf32> to vector<16x512xbf16>
    %c0_12 = arith.constant 0 : index
    %c0_13 = arith.constant 0 : index
    %19 = vector.load %arg6[%c0_12, %c0_13] : memref<512x128xbf16, #tpu.memory_space<vmem>>, vector<512x128xbf16>
    %cst_14 = arith.constant dense<0.000000e+00> : vector<16x128xf32>
    %20 = tpu.matmul %18, %19, %cst_14 {dimension_numbers = #tpu.dot_dimension_numbers<[1], [0], [0], [1], [0, 0, 1, 1], [], []>} : vector<16x512xbf16>, vector<512x128xbf16>, vector<16x128xf32> -> vector<16x128xf32>
    %c0_15 = arith.constant 0 : index
    %c0_16 = arith.constant 0 : index
    %21 = vector.load %arg7[%c0_15, %c0_16] : memref<1x128xf32, #tpu.memory_space<vmem>>, vector<1x128xf32>
    %22 = vector.broadcast %21 : vector<1x128xf32> to vector<16x128xf32>
    %23 = arith.addf %20, %22 : vector<16x128xf32>
    %cst_17 = arith.constant 0.000000e+00 : f32
    %24 = vector.broadcast %cst_17 : f32 to vector<16x128xf32>
    %25 = arith.maximumf %23, %24 : vector<16x128xf32>
    %26 = vector.broadcast %cst_17 : f32 to vector<16x128xf32>
    %27 = arith.subf %23, %26 : vector<16x128xf32>
    %28 = arith.cmpf one, %27, %27 : vector<16x128xf32>
    %29 = vector.broadcast %cst_17 : f32 to vector<16x128xf32>
    %30 = arith.addf %23, %29 : vector<16x128xf32>
    %31 = math.absf %27 : vector<16x128xf32>
    %cst_18 = arith.constant 0.000000e+00 : f32
    %32 = vector.broadcast %cst_18 : f32 to vector<16x128xf32>
    %33 = arith.subf %32, %31 : vector<16x128xf32>
    %34 = math.exp %33 : vector<16x128xf32>
    %35 = math.log1p %34 : vector<16x128xf32>
    %36 = arith.addf %25, %35 : vector<16x128xf32>
    %37 = arith.select %28, %30, %36 : vector<16x128xi1>, vector<16x128xf32>
    %cst_19 = arith.constant 1.000000e-07 : f32
    %38 = vector.broadcast %cst_19 : f32 to vector<16x128xf32>
    %39 = arith.addf %37, %38 : vector<16x128xf32>
    %40 = tpu.iota {dimensions = array<i32: 1>} : vector<16x128xi32>
    %c16_i32 = arith.constant 16 : i32
    %41 = vector.broadcast %c16_i32 : i32 to vector<16x128xi32>
    %42 = arith.cmpi slt, %40, %41 : vector<16x128xi32>
    %43 = arith.select %42, %23, %39 : vector<16x128xi1>, vector<16x128xf32>
    %c0_20 = arith.constant 0 : index
    %c0_21 = arith.constant 0 : index
    %44 = vector.load %arg8[%c0_20, %c0_21] : memref<16x128xf32, #tpu.memory_space<vmem>>, vector<16x128xf32>
    tpu.vector_store %arg8[%c0_20, %c0_21], %43 {strides = array<i32>} : memref<16x128xf32, #tpu.memory_space<vmem>>, vector<16x128xf32>,
    return
  }
  func.func @transform_0(%arg0: i32) -> (i32, i32) {
    %c0_i32 = arith.constant 0 : i32
    %c0_i32_0 = arith.constant 0 : i32
    return %arg0, %c0_i32 : i32, i32
  }
  func.func @transform_1(%arg0: i32) -> (i32, i32) {
    %c0_i32 = arith.constant 0 : i32
    %c0_i32_0 = arith.constant 0 : i32
    %c0_i32_1 = arith.constant 0 : i32
    return %c0_i32, %c0_i32_0 : i32, i32
  }
  func.func @transform_2(%arg0: i32) -> (i32, i32) {
    %c0_i32 = arith.constant 0 : i32
    %c0_i32_0 = arith.constant 0 : i32
    %c0_i32_1 = arith.constant 0 : i32
    return %c0_i32, %c0_i32_0 : i32, i32
  }
  func.func @transform_3(%arg0: i32) -> (i32, i32) {
    %c0_i32 = arith.constant 0 : i32
    %c0_i32_0 = arith.constant 0 : i32
    %c0_i32_1 = arith.constant 0 : i32
    return %c0_i32, %c0_i32_0 : i32, i32
  }
  func.func @transform_4(%arg0: i32) -> (i32, i32) {
    %c0_i32 = arith.constant 0 : i32
    %c0_i32_0 = arith.constant 0 : i32
    %c0_i32_1 = arith.constant 0 : i32
    return %c0_i32, %c0_i32_0 : i32, i32
  }
  func.func @transform_5(%arg0: i32) -> (i32, i32) {
    %c0_i32 = arith.constant 0 : i32
    %c0_i32_0 = arith.constant 0 : i32
    %c0_i32_1 = arith.constant 0 : i32
    return %c0_i32, %c0_i32_0 : i32, i32
  }
  func.func @transform_6(%arg0: i32) -> (i32, i32) {
    %c0_i32 = arith.constant 0 : i32
    %c0_i32_0 = arith.constant 0 : i32
    %c0_i32_1 = arith.constant 0 : i32
    return %c0_i32, %c0_i32_0 : i32, i32
  }
  func.func @transform_7(%arg0: i32) -> (i32, i32) {
    %c0_i32 = arith.constant 0 : i32
    %c0_i32_0 = arith.constant 0 : i32
    return %arg0, %c0_i32 : i32, i32
  }
}

</mosaic_0001>

<bundles_post_ra>
// kernel: tpu_custom_call.1
= control target key start
LH: loop header
LB: loop body
LE: loop exit
PB: predicated region body
PF: predicated region fallthrough
CT: control target
= control target key end

     0   :  { %12 = vsyncpa [#allocation3], 0  ;;  %s2635_s0 = inlined_call_operand.hbm [shape: bf16[16,128], index: 0, kind: input, shape index: {}]   ;;  %s2636_s1 = inlined_call_operand.hbm [shape: bf16[128,512], index: 1, kind: input, shape index: {}]   ;;  %s2637_s2 = inlined_call_operand.vmem [shape: f32[1,512], index: 2, kind: input, shape index: {}]   ;;  %s2638_s3 = inlined_call_operand.hbm [shape: bf16[512,512], index: 3, kind: input, shape index: {}]   ;;  %s2639_s4 = inlined_call_operand.vmem [shape: f32[1,512], index: 4, kind: input, shape index: {}]   ;;  %s2640_s5 = inlined_call_operand.hbm [shape: bf16[512,128], index: 5, kind: input, shape index: {}]   ;;  %s2641_s6 = inlined_call_operand.vmem [shape: f32[1,128], index: 6, kind: input, shape index: {}]   ;;  %s2642_s7 = inlined_call_operand.hbm [shape: f32[16,128], index: 7, kind: output, shape index: {}]  }
   0x1   :  { %13 = vsyncpa [#allocation6], 0 }
   0x2   :  { %14 = vsyncpa [#allocation9], 0 }
   0x3   :  { %15 = vsyncpa [#allocation4], 0  ;;  %s2467_s24 = smov [#allocation5]   ;;  %s2349_s28 = scalar_lea.hbm %s2636_s1, 4096 }
   0x4   :  { %s33_s25 = sshll.u32 %s2467_s24, 4  ;;  %p2350_p0 = scmp.ne.s32.totalorder %s2636_s1, %s2349_s28  ;;  %s34_s25 = int_to_ptr.vmem [resolvable:$true] %s33_s25 }
   0x5   :  { %p2353_p1 = scmp.lt.u32.totalorder %s2349_s28, %s2636_s1 }
   0x7   :  { %p2355_p2 = pnand %p2353_p1, %p2350_p0 }
   0x9   :  { %2358 = shalt.err (!%p2355_p2)
}
   0xa   :  { %s2359_s10 = scalar_lea.vmem %s34_s25, 4096  ;;  %p2364_p4 = scmp.lt.s32.totalorder %s34_s25, %s34_s25 }
   0xb   :  { %p2360_p3 = scmp.ne.s32.totalorder %s34_s25, %s2359_s10  ;;  %p2365_p5 = scmp.lt.s32.totalorder %s2359_s10, %s2359_s10 }
   0xd   :  { %p2366_p6 = por %p2365_p5, %p2364_p4 }
   0xf   :  { %p2367_p7 = pnand %p2366_p6, %p2360_p3 }
  0x11   :  { %2370 = shalt.err (!%p2367_p7)
}
  0x12   :  { %s2468_s11 = smov 256   ;;  %s2469_s12 = smov 16  }
  0x13   :  { %39 = dma.hbm_to_vmem [thread:$0]  %s2636_s1, 4096, %s34_s25, [#allocation6], %s2468_s11, %s2468_s11, %s2469_s12  }
  0x14   :  { %s2470_s15 = smov [#allocation2]   ;;  %s2371_s19 = scalar_lea.hbm %s2635_s0, 128 }
  0x15   :  { %s21_s16 = sshll.u32 %s2470_s15, 4  ;;  %p2372_p8 = scmp.ne.s32.totalorder %s2635_s0, %s2371_s19  ;;  %s22_s16 = int_to_ptr.vmem [resolvable:$true] %s21_s16 }
  0x16   :  { %p2375_p9 = scmp.lt.u32.totalorder %s2371_s19, %s2635_s0 }
  0x18   :  { %p2377_p10 = pnand %p2375_p9, %p2372_p8 }
  0x1a   :  { %2380 = shalt.err (!%p2377_p10)
}
  0x1b   :  { %s2381_s24 = scalar_lea.vmem %s22_s16, 128  ;;  %p2386_p12 = scmp.lt.s32.totalorder %s22_s16, %s22_s16 }
  0x1c   :  { %p2382_p11 = scmp.ne.s32.totalorder %s22_s16, %s2381_s24  ;;  %p2387_p13 = scmp.lt.s32.totalorder %s2381_s24, %s2381_s24 }
  0x1e   :  { %p2388_p0 = por %p2387_p13, %p2386_p12 }
  0x20   :  { %p2389_p1 = pnand %p2388_p0, %p2382_p11 }
  0x22   :  { %2392 = shalt.err (!%p2389_p1)
}
  0x23   :  { %s2471_s1 = smov 64   ;;  %s2472_s25 = smov 4  }
  0x24   :  { %27 = dma.hbm_to_vmem [thread:$0]  %s2635_s0, 128, %s22_s16, [#allocation3], %s2471_s1, %s2471_s1, %s2472_s25  }
  0x25   :  { %s2473_s28 = smov [#allocation7]   ;;  %s2474_s30 = smov [#allocation8]  }
  0x26   :  { %s47_s29 = sshll.u32 %s2473_s28, 4  ;;  %s61_s8 = sshll.u32 %s2474_s30, 4  ;;  %s48_s29 = int_to_ptr.vmem [resolvable:$true] %s47_s29  ;;  %s2549_s8 = int_to_ptr.vmem [resolvable:$true] %s61_s8 }
  0x27   :  { %s2393_s13 = scalar_lea.hbm %s2638_s3, 16384 }
  0x28   :  { %p2394_p2 = scmp.ne.s32.totalorder %s2638_s3, %s2393_s13  ;;  %p2397_p3 = scmp.lt.u32.totalorder %s2393_s13, %s2638_s3 }
  0x2a   :  { %p2399_p4 = pnand %p2397_p3, %p2394_p2 }
  0x2c   :  { %2402 = shalt.err (!%p2399_p4)
}
  0x2d   :  { %s2403_s0 = scalar_lea.vmem %s48_s29, 16384  ;;  %p2408_p6 = scmp.lt.s32.totalorder %s48_s29, %s48_s29 }
  0x2e   :  { %p2404_p5 = scmp.ne.s32.totalorder %s48_s29, %s2403_s0  ;;  %p2409_p7 = scmp.lt.s32.totalorder %s2403_s0, %s2403_s0 }
  0x30   :  { %p2410_p8 = por %p2409_p7, %p2408_p6 }
  0x32   :  { %p2411_p9 = pnand %p2410_p8, %p2404_p5 }
  0x34   :  { %2414 = shalt.err (!%p2411_p9)
}
  0x35   :  { %53 = dma.hbm_to_vmem [thread:$0]  %s2638_s3, 16384, %s48_s29, [#allocation6], %s2468_s11, %s2468_s11, %s2469_s12  }
  0x36   :  { %s2415_s22 = scalar_lea.hbm %s2640_s5, 4096 }
  0x37   :  { %p2416_p10 = scmp.ne.s32.totalorder %s2640_s5, %s2415_s22  ;;  %p2419_p11 = scmp.lt.u32.totalorder %s2415_s22, %s2640_s5 }
  0x39   :  { %p2421_p12 = pnand %p2419_p11, %p2416_p10 }
  0x3b   :  { %2424 = shalt.err (!%p2421_p12)
}
  0x3c   :  { %s2425_s28 = scalar_lea.vmem %s2549_s8, 4096  ;;  %p2430_p0 = scmp.lt.s32.totalorder %s2549_s8, %s2549_s8 }
  0x3d   :  { %p2426_p13 = scmp.ne.s32.totalorder %s2549_s8, %s2425_s28  ;;  %p2431_p1 = scmp.lt.s32.totalorder %s2425_s28, %s2425_s28 }
  0x3f   :  { %p2432_p2 = por %p2431_p1, %p2430_p0 }
  0x41   :  { %p2433_p3 = pnand %p2432_p2, %p2426_p13 }
  0x43   :  { %2436 = shalt.err (!%p2433_p3)
}
  0x44   :  { %67 = dma.hbm_to_vmem [thread:$0]  %s2640_s5, 4096, %s2549_s8, [#allocation9], %s2471_s1, %s2471_s1, %s2472_s25  }
  0x45   :  { %2459 = dma.done.wait [#allocation3], 128  }
  0x46   :  { %2460 = vsyncadd [#allocation3], 4294967168 }
  0x47   :  { %2461 = dma.done.wait [#allocation6], 20480  }
  0x48   :  { %2462 = vsyncadd [#allocation6], 4294946816 }
  0x49   :  { %2463 = dma.done.wait [#allocation9], 4096  }
  0x4a   :  { %2464 = vsyncadd [#allocation9], 4294963200  ;;  %v2475_v0 = vmov 0   ;;  %v2068_v1 = vld [vmem:[#allocation5 + $0x4] ss:$16 sps:$4 sm:$0xff]   ;;  %v2092_v29 = vld [vmem:[#allocation2] sm:$0xff]  }
  0x4b   :  { %337 = vmatprep.mubr.bf16.mxu0 %v2475_v0  ;;  %380 = vmatprep.mubr.bf16.mxu1 %v2475_v0  ;;  %v2070_v2 = vld [vmem:[#allocation5] ss:$16 sps:$4 sm:$0xff]   ;;  %v2071_v3 = vld [vmem:[#allocation5 + $0x24] ss:$16 sps:$4 sm:$0xff]   ;;  %v2093_v10 = vld [vmem:[#allocation5 + $0xc] ss:$16 sps:$4 sm:$0xff]  }
  0x4c   :  { %305 = vmatprep.subr.bf16.mxu0 %v2068_v1  ;;  %v2073_v4 = vld [vmem:[#allocation5 + $0x20] ss:$16 sps:$4 sm:$0xff]   ;;  %v2074_v5 = vld [vmem:[#allocation5 + $0x44] ss:$16 sps:$4 sm:$0xff]   ;;  %v2095_v11 = vld [vmem:[#allocation5 + $0x8] ss:$16 sps:$4 sm:$0xff]   ;;  %348 = vmatprep.subr.bf16.mxu1 %v2093_v10 }
  0x4d   :  { %306 = vmatpush1.bf16.msra.mxu0 %v2070_v2  ;;  %v2076_v6 = vld [vmem:[#allocation5 + $0x40] ss:$16 sps:$4 sm:$0xff]   ;;  %v2077_v7 = vld [vmem:[#allocation5 + $0x64] ss:$16 sps:$4 sm:$0xff]   ;;  %v2096_v12 = vld [vmem:[#allocation5 + $0x2c] ss:$16 sps:$4 sm:$0xff]   ;;  %349 = vmatpush1.bf16.msra.mxu1 %v2095_v11 }
  0x4e   :  { %307 = vmatprep.subr.bf16.mxu0 %v2071_v3  ;;  %v2079_v8 = vld [vmem:[#allocation5 + $0x60] ss:$16 sps:$4 sm:$0xff]   ;;  %v2080_v9 = vld [vmem:[#allocation5 + $0x84] ss:$16 sps:$4 sm:$0xff]   ;;  %v2098_v14 = vld [vmem:[#allocation5 + $0x28] ss:$16 sps:$4 sm:$0xff]   ;;  %350 = vmatprep.subr.bf16.mxu1 %v2096_v12 }
  0x4f   :  { %v2082_v13 = vld [vmem:[#allocation5 + $0x80] ss:$16 sps:$4 sm:$0xff]   ;;  %v2083_v15 = vld [vmem:[#allocation5 + $0xa4] ss:$16 sps:$4 sm:$0xff]   ;;  %v2099_v16 = vld [vmem:[#allocation5 + $0x4c] ss:$16 sps:$4 sm:$0xff]  }
  0x50   :  { %v2085_v17 = vld [vmem:[#allocation5 + $0xa0] ss:$16 sps:$4 sm:$0xff]   ;;  %v2101_v18 = vld [vmem:[#allocation5 + $0x48] ss:$16 sps:$4 sm:$0xff]   ;;  %v2086_v19 = vld [vmem:[#allocation5 + $0xc4] ss:$16 sps:$4 sm:$0xff]  }
  0x51   :  { %308 = vmatpush1.bf16.msra.mxu0 %v2073_v4  ;;  %351 = vmatpush1.bf16.msra.mxu1 %v2098_v14  ;;  %v2102_v20 = vld [vmem:[#allocation5 + $0x6c] ss:$16 sps:$4 sm:$0xff]   ;;  %v2088_v21 = vld [vmem:[#allocation5 + $0xc0] ss:$16 sps:$4 sm:$0xff]   ;;  %v2104_v22 = vld [vmem:[#allocation5 + $0x68] ss:$16 sps:$4 sm:$0xff]  }
  0x52   :  { %309 = vmatprep.subr.bf16.mxu0 %v2074_v5  ;;  %352 = vmatprep.subr.bf16.mxu1 %v2099_v16  ;;  %v2089_v23 = vld [vmem:[#allocation5 + $0xe4] ss:$16 sps:$4 sm:$0xff]   ;;  %v2105_v24 = vld [vmem:[#allocation5 + $0x8c] ss:$16 sps:$4 sm:$0xff]   ;;  %v2091_v25 = vld [vmem:[#allocation5 + $0xe0] ss:$16 sps:$4 sm:$0xff]  }
  0x53   :  { %v2107_v26 = vld [vmem:[#allocation5 + $0x88] ss:$16 sps:$4 sm:$0xff]   ;;  %v2108_v27 = vld [vmem:[#allocation5 + $0xac] ss:$16 sps:$4 sm:$0xff]   ;;  %v2119_v28 = vld [vmem:[#allocation7 + $0x4] ss:$16 sps:$4 sm:$0xff]  }
  0x54   :  { %v2110_v30 = vld [vmem:[#allocation5 + $0xa8] ss:$16 sps:$4 sm:$0xff]   ;;  %v2117_v31 = vld [vmem:[#allocation7] ss:$16 sps:$4 sm:$0xff]   ;;  %v2111_v32 = vld [vmem:[#allocation5 + $0xcc] ss:$16 sps:$4 sm:$0xff]  }
  0x55   :  { %310 = vmatpush1.bf16.msra.mxu0 %v2076_v6  ;;  %353 = vmatpush1.bf16.msra.mxu1 %v2101_v18  ;;  %v2125_v33 = vld [vmem:[#allocation7 + $0x24] ss:$16 sps:$4 sm:$0xff]   ;;  %v2113_v34 = vld [vmem:[#allocation5 + $0xc8] ss:$16 sps:$4 sm:$0xff]   ;;  %v2123_v35 = vld [vmem:[#allocation7 + $0x20] ss:$16 sps:$4 sm:$0xff]  }
  0x56   :  { %311 = vmatprep.subr.bf16.mxu0 %v2077_v7  ;;  %354 = vmatprep.subr.bf16.mxu1 %v2102_v20  ;;  %v2114_v36 = vld [vmem:[#allocation5 + $0xec] ss:$16 sps:$4 sm:$0xff]   ;;  %v2131_v37 = vld [vmem:[#allocation7 + $0x44] ss:$16 sps:$4 sm:$0xff]   ;;  %v2116_v38 = vld [vmem:[#allocation5 + $0xe8] ss:$16 sps:$4 sm:$0xff]  }
  0x57   :  { %v2129_v39 = vld [vmem:[#allocation7 + $0x40] ss:$16 sps:$4 sm:$0xff]   ;;  %v2122_v40 = vld [vmem:[#allocation7 + $0xc] ss:$16 sps:$4 sm:$0xff]   ;;  %v2137_v41 = vld [vmem:[#allocation7 + $0x64] ss:$16 sps:$4 sm:$0xff]  }
  0x58   :  { %v2120_v42 = vld [vmem:[#allocation7 + $0x8] ss:$16 sps:$4 sm:$0xff]   ;;  %v2135_v43 = vld [vmem:[#allocation7 + $0x60] ss:$16 sps:$4 sm:$0xff]   ;;  %v2128_v44 = vld [vmem:[#allocation7 + $0x2c] ss:$16 sps:$4 sm:$0xff]  }
  0x59   :  { %312 = vmatpush1.bf16.msra.mxu0 %v2079_v8  ;;  %355 = vmatpush1.bf16.msra.mxu1 %v2104_v22  ;;  %v2143_v45 = vld [vmem:[#allocation7 + $0x84] ss:$16 sps:$4 sm:$0xff]   ;;  %v2126_v46 = vld [vmem:[#allocation7 + $0x28] ss:$16 sps:$4 sm:$0xff]   ;;  %v2141_v47 = vld [vmem:[#allocation7 + $0x80] ss:$16 sps:$4 sm:$0xff]  }
  0x5a   :  { %313 = vmatprep.subr.bf16.mxu0 %v2080_v9  ;;  %356 = vmatprep.subr.bf16.mxu1 %v2105_v24  ;;  %v2134_v48 = vld [vmem:[#allocation7 + $0x4c] ss:$16 sps:$4 sm:$0xff]   ;;  %v2149_v49 = vld [vmem:[#allocation7 + $0xa4] ss:$16 sps:$4 sm:$0xff]   ;;  %v2132_v50 = vld [vmem:[#allocation7 + $0x48] ss:$16 sps:$4 sm:$0xff]  }
  0x5b   :  { %v2147_v51 = vld [vmem:[#allocation7 + $0xa0] ss:$16 sps:$4 sm:$0xff]   ;;  %v2140_v52 = vld [vmem:[#allocation7 + $0x6c] ss:$16 sps:$4 sm:$0xff]   ;;  %v2155_v53 = vld [vmem:[#allocation7 + $0xc4] ss:$16 sps:$4 sm:$0xff]  }
  0x5c   :  { %v2138_v54 = vld [vmem:[#allocation7 + $0x68] ss:$16 sps:$4 sm:$0xff]   ;;  %v2153_v55 = vld [vmem:[#allocation7 + $0xc0] ss:$16 sps:$4 sm:$0xff]   ;;  %v2146_v56 = vld [vmem:[#allocation7 + $0x8c] ss:$16 sps:$4 sm:$0xff]  }
  0x5d   :  { %314 = vmatpush1.bf16.msra.mxu0 %v2082_v13  ;;  %357 = vmatpush1.bf16.msra.mxu1 %v2107_v26  ;;  %v2161_v57 = vld [vmem:[#allocation7 + $0xe4] ss:$16 sps:$4 sm:$0xff]   ;;  %v2144_v58 = vld [vmem:[#allocation7 + $0x88] ss:$16 sps:$4 sm:$0xff]   ;;  %v2159_v59 = vld [vmem:[#allocation7 + $0xe0] ss:$16 sps:$4 sm:$0xff]  }
  0x5e   :  { %315 = vmatprep.subr.bf16.mxu0 %v2083_v15  ;;  %358 = vmatprep.subr.bf16.mxu1 %v2108_v27  ;;  %v2152_v60 = vld [vmem:[#allocation7 + $0xac] ss:$16 sps:$4 sm:$0xff]   ;;  %v2167_v61 = vld [vmem:[#allocation7 + $0x104] ss:$16 sps:$4 sm:$0xff]   ;;  %v2150_v62 = vld [vmem:[#allocation7 + $0xa8] ss:$16 sps:$4 sm:$0xff]  }
  0x5f   :  { %v2165_v63 = vld [vmem:[#allocation7 + $0x100] ss:$16 sps:$4 sm:$0xff]   ;;  %v2158_v0 = vld [vmem:[#allocation7 + $0xcc] ss:$16 sps:$4 sm:$0xff]   ;;  %v2173_v1 = vld [vmem:[#allocation7 + $0x124] ss:$16 sps:$4 sm:$0xff]  }
  0x60   :  { %v2156_v2 = vld [vmem:[#allocation7 + $0xc8] ss:$16 sps:$4 sm:$0xff]   ;;  %v2171_v3 = vld [vmem:[#allocation7 + $0x120] ss:$16 sps:$4 sm:$0xff]   ;;  %v2164_v4 = vld [vmem:[#allocation7 + $0xec] ss:$16 sps:$4 sm:$0xff]  }
  0x61   :  { %316 = vmatpush1.bf16.msra.mxu0 %v2085_v17  ;;  %359 = vmatpush1.bf16.msra.mxu1 %v2110_v30  ;;  %v2179_v5 = vld [vmem:[#allocation7 + $0x144] ss:$16 sps:$4 sm:$0xff]   ;;  %v2162_v6 = vld [vmem:[#allocation7 + $0xe8] ss:$16 sps:$4 sm:$0xff]   ;;  %v2177_v7 = vld [vmem:[#allocation7 + $0x140] ss:$16 sps:$4 sm:$0xff]  }
  0x62   :  { %317 = vmatprep.subr.bf16.mxu0 %v2086_v19  ;;  %360 = vmatprep.subr.bf16.mxu1 %v2111_v32  ;;  %v2170_v8 = vld [vmem:[#allocation7 + $0x10c] ss:$16 sps:$4 sm:$0xff]   ;;  %v2185_v9 = vld [vmem:[#allocation7 + $0x164] ss:$16 sps:$4 sm:$0xff]   ;;  %v2168_v10 = vld [vmem:[#allocation7 + $0x108] ss:$16 sps:$4 sm:$0xff]  }
  0x63   :  { %v2183_v11 = vld [vmem:[#allocation7 + $0x160] ss:$16 sps:$4 sm:$0xff]   ;;  %v2176_v12 = vld [vmem:[#allocation7 + $0x12c] ss:$16 sps:$4 sm:$0xff]   ;;  %v2191_v13 = vld [vmem:[#allocation7 + $0x184] ss:$16 sps:$4 sm:$0xff]  }
  0x64   :  { %v2174_v14 = vld [vmem:[#allocation7 + $0x128] ss:$16 sps:$4 sm:$0xff]   ;;  %v2189_v15 = vld [vmem:[#allocation7 + $0x180] ss:$16 sps:$4 sm:$0xff]   ;;  %v2182_v16 = vld [vmem:[#allocation7 + $0x14c] ss:$16 sps:$4 sm:$0xff]  }
  0x65   :  { %318 = vmatpush1.bf16.msra.mxu0 %v2088_v21  ;;  %361 = vmatpush1.bf16.msra.mxu1 %v2113_v34  ;;  %v2180_v17 = vld [vmem:[#allocation7 + $0x148] ss:$16 sps:$4 sm:$0xff]   ;;  %v2188_v18 = vld [vmem:[#allocation7 + $0x16c] ss:$16 sps:$4 sm:$0xff]   ;;  %v2197_v22 = vld [vmem:[#allocation7 + $0x1a4] ss:$16 sps:$4 sm:$0xff]  }
  0x66   :  { %319 = vmatprep.subr.bf16.mxu0 %v2089_v23  ;;  %362 = vmatprep.subr.bf16.mxu1 %v2114_v36  ;;  %v2186_v19 = vld [vmem:[#allocation7 + $0x168] ss:$16 sps:$4 sm:$0xff]   ;;  %v2194_v20 = vld [vmem:[#allocation7 + $0x18c] ss:$16 sps:$4 sm:$0xff]   ;;  %v2195_v24 = vld [vmem:[#allocation7 + $0x1a0] ss:$16 sps:$4 sm:$0xff]   ;;  %v119_v36 = vlaneseq }
  0x67   :  { %v2192_v21 = vld [vmem:[#allocation7 + $0x188] ss:$16 sps:$4 sm:$0xff]   ;;  %v2200_v23 = vld [vmem:[#allocation7 + $0x1ac] ss:$16 sps:$4 sm:$0xff]   ;;  %v2203_v26 = vld [vmem:[#allocation7 + $0x1c4] ss:$16 sps:$4 sm:$0xff]  }
  0x68   :  { %v2206_v27 = vld [vmem:[#allocation7 + $0x1cc] ss:$16 sps:$4 sm:$0xff]   ;;  %v2209_v30 = vld [vmem:[#allocation7 + $0x1e4] ss:$16 sps:$4 sm:$0xff]   ;;  %v2207_v32 = vld [vmem:[#allocation7 + $0x1e0] ss:$16 sps:$4 sm:$0xff]  }
  0x69   :  { %320 = vmatpush1.bf16.msra.mxu0 %v2091_v25  ;;  %363 = vmatpush1.bf16.msra.mxu1 %v2116_v38  ;;  %v2198_v25 = vld [vmem:[#allocation7 + $0x1a8] ss:$16 sps:$4 sm:$0xff]   ;;  %v2215_v34 = vld [vmem:[#allocation7 + $0x204] ss:$16 sps:$4 sm:$0xff]  }
  0x6a   :  { %1201 = vmatprep.subr.bf16.mxu0 %v2119_v28  ;;  %1287 = vmatprep.subr.bf16.mxu1 %v2122_v40  ;;  %v2201_v28 = vld [vmem:[#allocation7 + $0x1c0] ss:$16 sps:$4 sm:$0xff]  }
  0x6c   :  { %338 = vmatmul.mubr.bf16.vlgmr.msra.gmra.mrb[0].mxu0 %v2092_v29  ;;  %381 = vmatmul.mubr.bf16.vlgmr.msra.gmra.mrb[0].mxu1 %v2092_v29  ;;  %v2204_v29 = vld [vmem:[#allocation7 + $0x1c8] ss:$16 sps:$4 sm:$0xff]  }
  0x6d   :  { %1202 = vmatpush1.bf16.msra.mxu0 %v2117_v31  ;;  %1288 = vmatpush1.bf16.msra.mxu1 %v2120_v42  ;;  %v2212_v31 = vld [vmem:[#allocation7 + $0x1ec] ss:$16 sps:$4 sm:$0xff]  }
  0x6e   :  { %1203 = vmatprep.subr.bf16.mxu0 %v2125_v33  ;;  %1289 = vmatprep.subr.bf16.mxu1 %v2128_v44  ;;  %v2210_v33 = vld [vmem:[#allocation7 + $0x1e8] ss:$16 sps:$4 sm:$0xff]  }
  0x71   :  { %1204 = vmatpush1.bf16.msra.mxu0 %v2123_v35  ;;  %1290 = vmatpush1.bf16.msra.mxu1 %v2126_v46  ;;  %v2218_v35 = vld [vmem:[#allocation7 + $0x20c] ss:$16 sps:$4 sm:$0xff]  }
  0x72   :  { %1205 = vmatprep.subr.bf16.mxu0 %v2131_v37  ;;  %1291 = vmatprep.subr.bf16.mxu1 %v2134_v48  ;;  %v2587_v37 = vshrl.u32 %v119_v36, 7 }
  0x74   :  { %v121_v38 = vsub.s32 0, %v2587_v37  ;;  %v125_v40 = vsub.s32 1, %v2587_v37 }
  0x75   :  { %1206 = vmatpush1.bf16.msra.mxu0 %v2129_v39  ;;  %1292 = vmatpush1.bf16.msra.mxu1 %v2132_v50  ;;  %v117_v39 = vld [vmem:[%s2637_s2] sm:$0xf] }
  0x76   :  { %1207 = vmatprep.subr.bf16.mxu0 %v2137_v41  ;;  %1293 = vmatprep.subr.bf16.mxu1 %v2140_v52  ;;  %v122_v41 = vrot.slane %v117_v39, %v121_v38  ;;  %v126_v42 = vrot.slane %v117_v39, %v125_v40 }
  0x79   :  { %1208 = vmatpush1.bf16.msra.mxu0 %v2135_v43  ;;  %1294 = vmatpush1.bf16.msra.mxu1 %v2138_v54  ;;  %v129_v54 = vsub.s32 2, %v2587_v37 }
  0x7a   :  { %1209 = vmatprep.subr.bf16.mxu0 %v2143_v45  ;;  %1295 = vmatprep.subr.bf16.mxu1 %v2146_v56  ;;  %v133_v56 = vsub.s32 3, %v2587_v37 }
  0x7d   :  { %1210 = vmatpush1.bf16.msra.mxu0 %v2141_v47  ;;  %1296 = vmatpush1.bf16.msra.mxu1 %v2144_v58 }
  0x7e   :  { %1211 = vmatprep.subr.bf16.mxu0 %v2149_v49  ;;  %1297 = vmatprep.subr.bf16.mxu1 %v2152_v60 }
  0x81   :  { %1212 = vmatpush1.bf16.msra.mxu0 %v2147_v51  ;;  %1298 = vmatpush1.bf16.msra.mxu1 %v2150_v62  ;;  %v130_v62 = vrot.slane %v117_v39, %v129_v54 }
  0x82   :  { %1213 = vmatprep.subr.bf16.mxu0 %v2155_v53  ;;  %1299 = vmatprep.subr.bf16.mxu1 %v2158_v0  ;;  %v2213_v0 = vld [vmem:[#allocation7 + $0x200] ss:$16 sps:$4 sm:$0xff]  }
  0x85   :  { %1214 = vmatpush1.bf16.msra.mxu0 %v2153_v55  ;;  %1300 = vmatpush1.bf16.msra.mxu1 %v2156_v2  ;;  %v134_v2 = vrot.slane %v117_v39, %v133_v56  ;;  %v2240_v39 = vld [vmem:[#allocation7 + $0x288] ss:$16 sps:$4 sm:$0xff]  }
  0x86   :  { %1215 = vmatprep.subr.bf16.mxu0 %v2161_v57  ;;  %1301 = vmatprep.subr.bf16.mxu1 %v2164_v4  ;;  %v2224_v4 = vld [vmem:[#allocation7 + $0x22c] ss:$16 sps:$4 sm:$0xff]  }
  0x89   :  { %1216 = vmatpush1.bf16.msra.mxu0 %v2159_v59  ;;  %1302 = vmatpush1.bf16.msra.mxu1 %v2162_v6  ;;  %v2219_v6 = vld [vmem:[#allocation7 + $0x220] ss:$16 sps:$4 sm:$0xff]  }
  0x8a   :  { %1217 = vmatprep.subr.bf16.mxu0 %v2167_v61  ;;  %1303 = vmatprep.subr.bf16.mxu1 %v2170_v8 }
  0x8d   :  { %1218 = vmatpush1.bf16.msra.mxu0 %v2165_v63  ;;  %1304 = vmatpush1.bf16.msra.mxu1 %v2168_v10  ;;  %v2227_v10 = vld [vmem:[#allocation7 + $0x244] ss:$16 sps:$4 sm:$0xff]  }
  0x8e   :  { %1219 = vmatprep.subr.bf16.mxu0 %v2173_v1  ;;  %1305 = vmatprep.subr.bf16.mxu1 %v2176_v12  ;;  %v2216_v1 = vld [vmem:[#allocation7 + $0x208] ss:$16 sps:$4 sm:$0xff]  }
  0x91   :  { %1220 = vmatpush1.bf16.msra.mxu0 %v2171_v3  ;;  %1306 = vmatpush1.bf16.msra.mxu1 %v2174_v14  ;;  %v2221_v3 = vld [vmem:[#allocation7 + $0x224] ss:$16 sps:$4 sm:$0xff]  }
  0x92   :  { %1221 = vmatprep.subr.bf16.mxu0 %v2179_v5  ;;  %1307 = vmatprep.subr.bf16.mxu1 %v2182_v16 }
  0x95   :  { %1222 = vmatpush1.bf16.msra.mxu0 %v2177_v7  ;;  %1308 = vmatpush1.bf16.msra.mxu1 %v2180_v17 }
  0x96   :  { %1223 = vmatprep.subr.bf16.mxu0 %v2185_v9  ;;  %1309 = vmatprep.subr.bf16.mxu1 %v2188_v18  ;;  %v2222_v9 = vld [vmem:[#allocation7 + $0x228] ss:$16 sps:$4 sm:$0xff]  }
  0x99   :  { %1224 = vmatpush1.bf16.msra.mxu0 %v2183_v11  ;;  %1310 = vmatpush1.bf16.msra.mxu1 %v2186_v19 }
  0x9a   :  { %1225 = vmatprep.subr.bf16.mxu0 %v2191_v13  ;;  %1311 = vmatprep.subr.bf16.mxu1 %v2194_v20  ;;  %v2230_v13 = vld [vmem:[#allocation7 + $0x24c] ss:$16 sps:$4 sm:$0xff]  }
  0x9d   :  { %1226 = vmatpush1.bf16.msra.mxu0 %v2189_v15  ;;  %1312 = vmatpush1.bf16.msra.mxu1 %v2192_v21  ;;  %v2225_v21 = vld [vmem:[#allocation7 + $0x240] ss:$16 sps:$4 sm:$0xff]  }
  0x9e   :  { %1227 = vmatprep.subr.bf16.mxu0 %v2197_v22  ;;  %1313 = vmatprep.subr.bf16.mxu1 %v2200_v23  ;;  %v2228_v22 = vld [vmem:[#allocation7 + $0x248] ss:$16 sps:$4 sm:$0xff]  }
  0xa1   :  { %1228 = vmatpush1.bf16.msra.mxu0 %v2195_v24  ;;  %1314 = vmatpush1.bf16.msra.mxu1 %v2198_v25  ;;  %v2233_v25 = vld [vmem:[#allocation7 + $0x264] ss:$16 sps:$4 sm:$0xff]  }
  0xa2   :  { %1229 = vmatprep.subr.bf16.mxu0 %v2203_v26  ;;  %1315 = vmatprep.subr.bf16.mxu1 %v2206_v27  ;;  %v2236_v26 = vld [vmem:[#allocation7 + $0x26c] ss:$16 sps:$4 sm:$0xff]  }
  0xa5   :  { %1230 = vmatpush1.bf16.msra.mxu0 %v2201_v28  ;;  %1316 = vmatpush1.bf16.msra.mxu1 %v2204_v29 }
  0xa6   :  { %1231 = vmatprep.subr.bf16.mxu0 %v2209_v30  ;;  %1317 = vmatprep.subr.bf16.mxu1 %v2212_v31  ;;  %v2231_v30 = vld [vmem:[#allocation7 + $0x260] ss:$16 sps:$4 sm:$0xff]   ;;  %v2234_v31 = vld [vmem:[#allocation7 + $0x268] ss:$16 sps:$4 sm:$0xff]  }
  0xa9   :  { %1232 = vmatpush1.bf16.msra.mxu0 %v2207_v32  ;;  %1318 = vmatpush1.bf16.msra.mxu1 %v2210_v33  ;;  %v2239_v33 = vld [vmem:[#allocation7 + $0x284] ss:$16 sps:$4 sm:$0xff]  }
  0xaa   :  { %1244 = vmatprep.subr.bf16.mxu0 %v2215_v34  ;;  %1330 = vmatprep.subr.bf16.mxu1 %v2218_v35  ;;  %v2242_v34 = vld [vmem:[#allocation7 + $0x28c] ss:$16 sps:$4 sm:$0xff]   ;;  %v2237_v35 = vld [vmem:[#allocation7 + $0x280] ss:$16 sps:$4 sm:$0xff]  }
 0x13f   :  { %v339_v43 = vpop.f32.mrb[0].mxu0  ;;  %v382_v5 = vpop.f32.mrb[0].mxu1 }
 0x140   :  { %v340_v44 = vadd.f32 %v339_v43, %v122_v41  ;;  %v341_v45 = vpop.f32.mrb[1].mxu0  ;;  %v383_v7 = vadd.f32 %v382_v5, %v130_v62  ;;  %v384_v8 = vpop.f32.mrb[1].mxu1  ;;  %v2243_v43 = vld [vmem:[#allocation7 + $0x2a0] ss:$16 sps:$4 sm:$0xff]  }
 0x141   :  { %v342_v46 = vadd.f32 %v341_v45, %v126_v42  ;;  %v343_v47 = vpop.f32.mrb[2].mxu0  ;;  %v385_v11 = vadd.f32 %v384_v8, %v134_v2  ;;  %v386_v12 = vpop.f32.mrb[2].mxu1  ;;  %v2251_v45 = vld [vmem:[#allocation7 + $0x2c4] ss:$16 sps:$4 sm:$0xff]   ;;  %v2279_v5 = vld [vmem:[#allocation7 + $0x360] ss:$16 sps:$4 sm:$0xff]  }
 0x142   :  { %v391_v48 = vmul.f32 0.2, %v340_v44  ;;  %v344_v49 = vadd.f32 %v343_v47, %v122_v41  ;;  %v345_v50 = vpop.f32.mrb[3].mxu0  ;;  %v393_v14 = vmul.f32 0.2, %v383_v7  ;;  %v387_v15 = vadd.f32 %v386_v12, %v130_v62  ;;  %v388_v16 = vpop.f32.mrb[3].mxu1 }
 0x143   :  { %v392_v51 = vmul.f32 0.2, %v342_v46  ;;  %v346_v52 = vadd.f32 %v345_v50, %v126_v42  ;;  %v394_v17 = vmul.f32 0.2, %v385_v11  ;;  %v389_v18 = vadd.f32 %v388_v16, %v134_v2  ;;  %v2245_v41 = vld [vmem:[#allocation7 + $0x2a4] ss:$16 sps:$4 sm:$0xff]  }
 0x144   :  { %v395_v53 = vmul.f32 0.2, %v344_v49  ;;  %v399_v57 = vmax.f32 %v340_v44, %v391_v48  ;;  %v401_v19 = vmax.f32 %v383_v7, %v393_v14  ;;  %v397_v20 = vmul.f32 0.2, %v387_v15  ;;  %v2248_v42 = vld [vmem:[#allocation7 + $0x2ac] ss:$16 sps:$4 sm:$0xff]  }
 0x145   :  { %v396_v55 = vmul.f32 0.2, %v346_v52  ;;  %v400_v59 = vmax.f32 %v342_v46, %v392_v51  ;;  %v402_v23 = vmax.f32 %v385_v11, %v394_v17  ;;  %v398_v24 = vmul.f32 0.2, %v389_v18  ;;  %v2246_v44 = vld [vmem:[#allocation7 + $0x2a8] ss:$16 sps:$4 sm:$0xff]  }
 0x146   :  { %v403_v58 = vmax.f32 %v344_v49, %v395_v53  ;;  %v405_v27 = vmax.f32 %v387_v15, %v397_v20  ;;  %v2254_v46 = vld [vmem:[#allocation7 + $0x2cc] ss:$16 sps:$4 sm:$0xff]   ;;  %v2249_v47 = vld [vmem:[#allocation7 + $0x2c0] ss:$16 sps:$4 sm:$0xff]   ;;  %v2252_v48 = vld [vmem:[#allocation7 + $0x2c8] ss:$16 sps:$4 sm:$0xff]  }
 0x147   :  { %v404_v60 = vmax.f32 %v346_v52, %v396_v55  ;;  %v406_v28 = vmax.f32 %v389_v18, %v398_v24  ;;  %v2257_v49 = vld [vmem:[#allocation7 + $0x2e4] ss:$16 sps:$4 sm:$0xff]   ;;  %v2260_v50 = vld [vmem:[#allocation7 + $0x2ec] ss:$16 sps:$4 sm:$0xff]   ;;  %v2255_v51 = vld [vmem:[#allocation7 + $0x2e0] ss:$16 sps:$4 sm:$0xff]  }
 0x148   :  { %v407_v61 = vpack.c.bf16 %v403_v58, %v399_v57  ;;  %v2604_v29 = vpack.c.bf16 %v405_v27, %v401_v19  ;;  %v2258_v52 = vld [vmem:[#allocation7 + $0x2e8] ss:$16 sps:$4 sm:$0xff]   ;;  %v2263_v53 = vld [vmem:[#allocation7 + $0x304] ss:$16 sps:$4 sm:$0xff]   ;;  %v2266_v55 = vld [vmem:[#allocation7 + $0x30c] ss:$16 sps:$4 sm:$0xff]  }
 0x149   :  { %v408_v63 = vpack.c.bf16 %v404_v60, %v400_v59  ;;  %v410_v32 = vpack.c.bf16 %v406_v28, %v402_v23  ;;  %v2261_v57 = vld [vmem:[#allocation7 + $0x300] ss:$16 sps:$4 sm:$0xff]   ;;  %v2264_v58 = vld [vmem:[#allocation7 + $0x308] ss:$16 sps:$4 sm:$0xff]   ;;  %v2269_v59 = vld [vmem:[#allocation7 + $0x324] ss:$16 sps:$4 sm:$0xff]  }
 0x14a   :  { %v2272_v60 = vld [vmem:[#allocation7 + $0x32c] ss:$16 sps:$4 sm:$0xff]   ;;  %v2270_v62 = vld [vmem:[#allocation7 + $0x328] ss:$16 sps:$4 sm:$0xff]   ;;  %v2287_v7 = vld [vmem:[#allocation7 + $0x384] ss:$16 sps:$4 sm:$0xff]  }
 0x14b   :  { %1233 = vmatprep.mubr.bf16.mxu0 %v408_v63  ;;  %1319 = vmatprep.mubr.bf16.mxu1 %v408_v63  ;;  %v2275_v63 = vld [vmem:[#allocation7 + $0x344] ss:$16 sps:$4 sm:$0xff]   ;;  %v2276_v2 = vld [vmem:[#allocation7 + $0x348] ss:$16 sps:$4 sm:$0xff]   ;;  %v2290_v8 = vld [vmem:[#allocation7 + $0x38c] ss:$16 sps:$4 sm:$0xff]  }
 0x14c   :  { %1234 = vmatmul.mubr.bf16.vlgmr.msra.gmra.mrb[4].mxu0 %v407_v61  ;;  %1320 = vmatmul.mubr.bf16.vlgmr.msra.gmra.mrb[4].mxu1 %v407_v61  ;;  %v2267_v61 = vld [vmem:[#allocation7 + $0x320] ss:$16 sps:$4 sm:$0xff]   ;;  %v2293_v11 = vld [vmem:[#allocation7 + $0x3a4] ss:$16 sps:$4 sm:$0xff]   ;;  %v2296_v12 = vld [vmem:[#allocation7 + $0x3ac] ss:$16 sps:$4 sm:$0xff]  }
 0x14d   :  { %1245 = vmatpush1.bf16.msra.mxu0 %v2213_v0  ;;  %1331 = vmatpush1.bf16.msra.mxu1 %v2216_v1  ;;  %v2278_v0 = vld [vmem:[#allocation7 + $0x34c] ss:$16 sps:$4 sm:$0xff]   ;;  %v2273_v1 = vld [vmem:[#allocation7 + $0x340] ss:$16 sps:$4 sm:$0xff]   ;;  %v2294_v14 = vld [vmem:[#allocation7 + $0x3a8] ss:$16 sps:$4 sm:$0xff]  }
 0x14e   :  { %1246 = vmatprep.subr.bf16.mxu0 %v2221_v3  ;;  %1332 = vmatprep.subr.bf16.mxu1 %v2224_v4  ;;  %v2281_v3 = vld [vmem:[#allocation7 + $0x364] ss:$16 sps:$4 sm:$0xff]   ;;  %v2284_v4 = vld [vmem:[#allocation7 + $0x36c] ss:$16 sps:$4 sm:$0xff]   ;;  %v2297_v17 = vld [vmem:[#allocation7 + $0x3c0] ss:$16 sps:$4 sm:$0xff]  }
 0x14f   :  { %1276 = vmatprep.mubr.bf16.mxu0 %v410_v32  ;;  %1362 = vmatprep.mubr.bf16.mxu1 %v410_v32  ;;  %v2299_v15 = vld [vmem:[#allocation7 + $0x3c4] ss:$16 sps:$4 sm:$0xff]   ;;  %v2302_v16 = vld [vmem:[#allocation7 + $0x3cc] ss:$16 sps:$4 sm:$0xff]   ;;  %v2300_v18 = vld [vmem:[#allocation7 + $0x3c8] ss:$16 sps:$4 sm:$0xff]  }
 0x150   :  { %v2305_v19 = vld [vmem:[#allocation7 + $0x3e4] ss:$16 sps:$4 sm:$0xff]   ;;  %v2308_v20 = vld [vmem:[#allocation7 + $0x3ec] ss:$16 sps:$4 sm:$0xff]  }
 0x151   :  { %1247 = vmatpush1.bf16.msra.mxu0 %v2219_v6  ;;  %1333 = vmatpush1.bf16.msra.mxu1 %v2222_v9  ;;  %v2282_v6 = vld [vmem:[#allocation7 + $0x368] ss:$16 sps:$4 sm:$0xff]   ;;  %v2285_v9 = vld [vmem:[#allocation7 + $0x380] ss:$16 sps:$4 sm:$0xff]  }
 0x152   :  { %1248 = vmatprep.subr.bf16.mxu0 %v2227_v10  ;;  %1334 = vmatprep.subr.bf16.mxu1 %v2230_v13  ;;  %v2288_v10 = vld [vmem:[#allocation7 + $0x388] ss:$16 sps:$4 sm:$0xff]   ;;  %v2291_v13 = vld [vmem:[#allocation7 + $0x3a0] ss:$16 sps:$4 sm:$0xff]  }
 0x153   :  { %v2309_v23 = vld [vmem:[#allocation8 + $0x40] sm:$0xff]   ;;  %v2313_v27 = vld [vmem:[#allocation8 + $0x48] sm:$0xff]   ;;  %v2317_v32 = vld [vmem:[#allocation8 + $0x50] sm:$0xff]  }
 0x154   :  { %v2310_v24 = vld [vmem:[#allocation8 + $0xc0] sm:$0xff]   ;;  %v2314_v28 = vld [vmem:[#allocation8 + $0xc8] sm:$0xff]  }
 0x155   :  { %1249 = vmatpush1.bf16.msra.mxu0 %v2225_v21  ;;  %1335 = vmatpush1.bf16.msra.mxu1 %v2228_v22  ;;  %v2303_v21 = vld [vmem:[#allocation7 + $0x3e0] ss:$16 sps:$4 sm:$0xff]   ;;  %v2306_v22 = vld [vmem:[#allocation7 + $0x3e8] ss:$16 sps:$4 sm:$0xff]  }
 0x156   :  { %1250 = vmatprep.subr.bf16.mxu0 %v2233_v25  ;;  %1336 = vmatprep.subr.bf16.mxu1 %v2236_v26  ;;  %v2311_v25 = vld [vmem:[#allocation8] sm:$0xff]  }
 0x157   :  { %v2312_v26 = vld [vmem:[#allocation8 + $0x80] sm:$0xff]  }
 0x159   :  { %1251 = vmatpush1.bf16.msra.mxu0 %v2231_v30  ;;  %1337 = vmatpush1.bf16.msra.mxu1 %v2234_v31  ;;  %v2315_v30 = vld [vmem:[#allocation8 + $0x8] sm:$0xff]  }
 0x15a   :  { %1252 = vmatprep.subr.bf16.mxu0 %v2239_v33  ;;  %1338 = vmatprep.subr.bf16.mxu1 %v2242_v34  ;;  %v2316_v31 = vld [vmem:[#allocation8 + $0x88] sm:$0xff]   ;;  %v2318_v33 = vld [vmem:[#allocation8 + $0xd0] sm:$0xff]  }
 0x15b   :  { %v2319_v34 = vld [vmem:[#allocation8 + $0x10] sm:$0xff]  }
 0x15d   :  { %1253 = vmatpush1.bf16.msra.mxu0 %v2237_v35  ;;  %1339 = vmatpush1.bf16.msra.mxu1 %v2240_v39  ;;  %v2320_v35 = vld [vmem:[#allocation8 + $0x90] sm:$0xff]   ;;  %v2321_v39 = vld [vmem:[#allocation8 + $0x58] sm:$0xff]  }
 0x15e   :  { %1254 = vmatprep.subr.bf16.mxu0 %v2245_v41  ;;  %1340 = vmatprep.subr.bf16.mxu1 %v2248_v42  ;;  %v2322_v41 = vld [vmem:[#allocation8 + $0xd8] sm:$0xff]  }
 0x15f   :  { %v2323_v42 = vld [vmem:[#allocation8 + $0x18] sm:$0xff]  }
 0x161   :  { %1255 = vmatpush1.bf16.msra.mxu0 %v2243_v43  ;;  %1341 = vmatpush1.bf16.msra.mxu1 %v2246_v44  ;;  %v2325_v43 = vld [vmem:[#allocation8 + $0x60] sm:$0xff]  }
 0x162   :  { %1256 = vmatprep.subr.bf16.mxu0 %v2251_v45  ;;  %1342 = vmatprep.subr.bf16.mxu1 %v2254_v46  ;;  %v2326_v44 = vld [vmem:[#allocation8 + $0xe0] sm:$0xff]  }
 0x163   :  { %v2327_v45 = vld [vmem:[#allocation8 + $0x20] sm:$0xff]  }
 0x164   :  { %v2328_v46 = vld [vmem:[#allocation8 + $0xa0] sm:$0xff]  }
 0x165   :  { %1257 = vmatpush1.bf16.msra.mxu0 %v2249_v47  ;;  %1343 = vmatpush1.bf16.msra.mxu1 %v2252_v48  ;;  %v2329_v47 = vld [vmem:[#allocation8 + $0x68] sm:$0xff]  }
 0x166   :  { %1258 = vmatprep.subr.bf16.mxu0 %v2257_v49  ;;  %1344 = vmatprep.subr.bf16.mxu1 %v2260_v50  ;;  %v2330_v48 = vld [vmem:[#allocation8 + $0xe8] sm:$0xff]  }
 0x167   :  { %v2331_v49 = vld [vmem:[#allocation8 + $0x28] sm:$0xff]  }
 0x168   :  { %v2332_v50 = vld [vmem:[#allocation8 + $0xa8] sm:$0xff]  }
 0x169   :  { %1259 = vmatpush1.bf16.msra.mxu0 %v2255_v51  ;;  %1345 = vmatpush1.bf16.msra.mxu1 %v2258_v52  ;;  %v2333_v51 = vld [vmem:[#allocation8 + $0x70] sm:$0xff]  }
 0x16a   :  { %1260 = vmatprep.subr.bf16.mxu0 %v2263_v53  ;;  %1346 = vmatprep.subr.bf16.mxu1 %v2266_v55  ;;  %v2334_v52 = vld [vmem:[#allocation8 + $0xf0] sm:$0xff]  }
 0x16b   :  { %v2335_v53 = vld [vmem:[#allocation8 + $0x30] sm:$0xff]  }
 0x16c   :  { %v2336_v55 = vld [vmem:[#allocation8 + $0xb0] sm:$0xff]  }
 0x16d   :  { %1261 = vmatpush1.bf16.msra.mxu0 %v2261_v57  ;;  %1347 = vmatpush1.bf16.msra.mxu1 %v2264_v58  ;;  %v2337_v57 = vld [vmem:[#allocation8 + $0x78] sm:$0xff]  }
 0x16e   :  { %1262 = vmatprep.subr.bf16.mxu0 %v2269_v59  ;;  %1348 = vmatprep.subr.bf16.mxu1 %v2272_v60  ;;  %v2338_v58 = vld [vmem:[#allocation8 + $0xf8] sm:$0xff]  }
 0x16f   :  { %v2339_v59 = vld [vmem:[#allocation8 + $0x38] sm:$0xff]  }
 0x170   :  { %v2340_v60 = vld [vmem:[#allocation8 + $0xb8] sm:$0xff]  }
 0x171   :  { %1263 = vmatpush1.bf16.msra.mxu0 %v2267_v61  ;;  %1349 = vmatpush1.bf16.msra.mxu1 %v2270_v62  ;;  %v539_v61 = vld [vmem:[%s2639_s4] sm:$0xf] }
 0x172   :  { %1264 = vmatprep.subr.bf16.mxu0 %v2275_v63  ;;  %1350 = vmatprep.subr.bf16.mxu1 %v2278_v0  ;;  %v544_v62 = vrot.slane %v539_v61, %v121_v38  ;;  %v552_v63 = vrot.slane %v539_v61, %v129_v54  ;;  %v548_v0 = vrot.slane %v539_v61, %v125_v40 }
 0x175   :  { %1265 = vmatpush1.bf16.msra.mxu0 %v2273_v1  ;;  %1351 = vmatpush1.bf16.msra.mxu1 %v2276_v2  ;;  %v556_v1 = vrot.slane %v539_v61, %v133_v56 }
 0x176   :  { %1266 = vmatprep.subr.bf16.mxu0 %v2281_v3  ;;  %1352 = vmatprep.subr.bf16.mxu1 %v2284_v4 }
 0x179   :  { %1267 = vmatpush1.bf16.msra.mxu0 %v2279_v5  ;;  %1353 = vmatpush1.bf16.msra.mxu1 %v2282_v6 }
 0x17a   :  { %1268 = vmatprep.subr.bf16.mxu0 %v2287_v7  ;;  %1354 = vmatprep.subr.bf16.mxu1 %v2290_v8 }
 0x17d   :  { %1269 = vmatpush1.bf16.msra.mxu0 %v2285_v9  ;;  %1355 = vmatpush1.bf16.msra.mxu1 %v2288_v10 }
 0x17e   :  { %1270 = vmatprep.subr.bf16.mxu0 %v2293_v11  ;;  %1356 = vmatprep.subr.bf16.mxu1 %v2296_v12 }
 0x181   :  { %1271 = vmatpush1.bf16.msra.mxu0 %v2291_v13  ;;  %1357 = vmatpush1.bf16.msra.mxu1 %v2294_v14 }
 0x182   :  { %1272 = vmatprep.subr.bf16.mxu0 %v2299_v15  ;;  %1358 = vmatprep.subr.bf16.mxu1 %v2302_v16 }
 0x185   :  { %1273 = vmatpush1.bf16.msra.mxu0 %v2297_v17  ;;  %1359 = vmatpush1.bf16.msra.mxu1 %v2300_v18 }
 0x186   :  { %1274 = vmatprep.subr.bf16.mxu0 %v2305_v19  ;;  %1360 = vmatprep.subr.bf16.mxu1 %v2308_v20 }
 0x189   :  { %1275 = vmatpush1.bf16.msra.mxu0 %v2303_v21  ;;  %1361 = vmatpush1.bf16.msra.mxu1 %v2306_v22 }
 0x18a   :  { %1996 = vmatprep.subr.bf16.mxu0 %v2309_v23  ;;  %2018 = vmatprep.subr.bf16.mxu1 %v2310_v24 }
 0x18c   :  { %1277 = vmatmul.mubr.bf16.vlgmr.msra.gmra.mrb[4].mxu0 %v2604_v29  ;;  %1363 = vmatmul.mubr.bf16.vlgmr.msra.gmra.mrb[4].mxu1 %v2604_v29  ;;  %v2324_v29 = vld [vmem:[#allocation8 + $0x98] sm:$0xff]  }
 0x18d   :  { %1997 = vmatpush3.bf16.msra.mxu0 %v2311_v25  ;;  %2019 = vmatpush3.bf16.msra.mxu1 %v2312_v26 }
 0x18e   :  { %1998 = vmatprep.subr.bf16.mxu0 %v2313_v27  ;;  %2020 = vmatprep.subr.bf16.mxu1 %v2314_v28 }
 0x191   :  { %1999 = vmatpush3.bf16.msra.mxu0 %v2315_v30  ;;  %2021 = vmatpush3.bf16.msra.mxu1 %v2316_v31 }
 0x192   :  { %2000 = vmatprep.subr.bf16.mxu0 %v2317_v32  ;;  %2022 = vmatprep.subr.bf16.mxu1 %v2318_v33 }
 0x195   :  { %2001 = vmatpush3.bf16.msra.mxu0 %v2319_v34  ;;  %2023 = vmatpush3.bf16.msra.mxu1 %v2320_v35 }
 0x196   :  { %2002 = vmatprep.subr.bf16.mxu0 %v2321_v39  ;;  %2024 = vmatprep.subr.bf16.mxu1 %v2322_v41  ;;  %v1963_v39 = vld [vmem:[%s2641_s6] ss:$0 sm:$0xff]  ;;  %s2476_s6 = smov [#allocation10]  }
 0x197   :  { %s1788_s29 = sshll.u32 %s2476_s6, 4  ;;  %s1789_s29 = int_to_ptr.vmem [resolvable:$true] %s1788_s29 }
 0x198   :  { %s2437_s30 = scalar_lea.vmem %s1789_s29, 256  ;;  %p2442_p5 = scmp.lt.s32.totalorder %s1789_s29, %s1789_s29 }
 0x199   :  { %2003 = vmatpush3.bf16.msra.mxu0 %v2323_v42  ;;  %2025 = vmatpush3.bf16.msra.mxu1 %v2324_v29  ;;  %p2438_p4 = scmp.ne.s32.totalorder %s1789_s29, %s2437_s30  ;;  %p2443_p6 = scmp.lt.s32.totalorder %s2437_s30, %s2437_s30 }
 0x19a   :  { %2004 = vmatprep.subr.bf16.mxu0 %v2325_v43  ;;  %2026 = vmatprep.subr.bf16.mxu1 %v2326_v44 }
 0x19b   :  { %p2444_p7 = por %p2443_p6, %p2442_p5 }
 0x19d   :  { %2005 = vmatpush3.bf16.msra.mxu0 %v2327_v45  ;;  %2027 = vmatpush3.bf16.msra.mxu1 %v2328_v46  ;;  %p2445_p8 = pnand %p2444_p7, %p2438_p4 }
 0x19e   :  { %2006 = vmatprep.subr.bf16.mxu0 %v2329_v47  ;;  %2028 = vmatprep.subr.bf16.mxu1 %v2330_v48 }
 0x1a1   :  { %2007 = vmatpush3.bf16.msra.mxu0 %v2331_v49  ;;  %2029 = vmatpush3.bf16.msra.mxu1 %v2332_v50 }
 0x1a2   :  { %2008 = vmatprep.subr.bf16.mxu0 %v2333_v51  ;;  %2030 = vmatprep.subr.bf16.mxu1 %v2334_v52 }
 0x1a5   :  { %2009 = vmatpush3.bf16.msra.mxu0 %v2335_v53  ;;  %2031 = vmatpush3.bf16.msra.mxu1 %v2336_v55 }
 0x1a6   :  { %2010 = vmatprep.subr.bf16.mxu0 %v2337_v57  ;;  %2032 = vmatprep.subr.bf16.mxu1 %v2338_v58 }
 0x1a9   :  { %2011 = vmatpush3.bf16.msra.mxu0 %v2339_v59  ;;  %2033 = vmatpush3.bf16.msra.mxu1 %v2340_v60 }
 0x25f   :  { %v1278_v2 = vpop.f32.mrb[4].mxu0  ;;  %v1364_v3 = vpop.f32.mrb[4].mxu1 }
 0x260   :  { %v2040_v4 = vadd.f32 %v1278_v2, %v544_v62  ;;  %v2044_v5 = vadd.f32 %v1364_v3, %v552_v63  ;;  %v1280_v6 = vpop.f32.mrb[5].mxu0  ;;  %v1366_v7 = vpop.f32.mrb[5].mxu1 }
 0x261   :  { %v2041_v8 = vadd.f32 %v1280_v6, %v548_v0  ;;  %v2045_v9 = vadd.f32 %v1366_v7, %v556_v1  ;;  %v1282_v10 = vpop.f32.mrb[6].mxu0  ;;  %v1368_v11 = vpop.f32.mrb[6].mxu1 }
 0x262   :  { %v1373_v38 = vmul.f32 0.2, %v2040_v4  ;;  %v1375_v12 = vmul.f32 0.2, %v2044_v5  ;;  %v2042_v13 = vadd.f32 %v1282_v10, %v544_v62  ;;  %v2046_v54 = vadd.f32 %v1368_v11, %v552_v63  ;;  %v1284_v14 = vpop.f32.mrb[7].mxu0  ;;  %v1370_v15 = vpop.f32.mrb[7].mxu1 }
 0x263   :  { %v1374_v40 = vmul.f32 0.2, %v2041_v8  ;;  %v1376_v16 = vmul.f32 0.2, %v2045_v9  ;;  %v2043_v37 = vadd.f32 %v1284_v14, %v548_v0  ;;  %v2047_v56 = vadd.f32 %v1370_v15, %v556_v1 }
 0x264   :  { %v1377_v17 = vmul.f32 0.2, %v2042_v13  ;;  %v1379_v18 = vmul.f32 0.2, %v2046_v54  ;;  %v1381_v21 = vmax.f32 %v2040_v4, %v1373_v38  ;;  %v1383_v22 = vmax.f32 %v2044_v5, %v1375_v12 }
 0x265   :  { %v1378_v19 = vmul.f32 0.2, %v2043_v37  ;;  %v1380_v20 = vmul.f32 0.2, %v2047_v56  ;;  %v1382_v25 = vmax.f32 %v2041_v8, %v1374_v40  ;;  %v1384_v26 = vmax.f32 %v2045_v9, %v1376_v16 }
 0x266   :  { %v1385_v23 = vmax.f32 %v2042_v13, %v1377_v17  ;;  %v1387_v24 = vmax.f32 %v2046_v54, %v1379_v18  ;;  %v1777_v12 = vand.u32 127, %v119_v36 }
 0x267   :  { %v1386_v27 = vmax.f32 %v2043_v37, %v1378_v19  ;;  %v1388_v28 = vmax.f32 %v2047_v56, %v1380_v20 }
 0x268   :  { %v1389_v30 = vpack.c.bf16 %v1385_v23, %v1381_v21  ;;  %v1391_v31 = vpack.c.bf16 %v1387_v24, %v1383_v22  ;;  %vm1778_vm3 = vcmp.lt.s32.totalorder %v1777_v12, 16 }
 0x269   :  { %v1390_v32 = vpack.c.bf16 %v1386_v27, %v1382_v25  ;;  %v1392_v33 = vpack.c.bf16 %v1388_v28, %v1384_v26 }
 0x26b   :  { %1688 = vmatprep.mubr.bf16.mxu0 %v1390_v32  ;;  %1729 = vmatprep.mubr.bf16.mxu1 %v1392_v33 }
 0x26c   :  { %1689 = vmatmul.mubr.bf16.vlgmr.msra.gmra.mrb[8].mxu0 %v1389_v30  ;;  %1730 = vmatmul.mubr.bf16.vlgmr.msra.gmra.mrb[8].mxu1 %v1391_v31 }
 0x33f   :  { %v2012_v34 = vpop.f32.mrb[8].mxu0  ;;  %v2034_v35 = vpop.f32.mrb[8].mxu1 }
 0x340   :  { %v2013_v41 = vpop.f32.mrb[9].mxu0  ;;  %v2035_v42 = vpop.f32.mrb[9].mxu1 }
 0x341   :  { %v2014_v29 = vadd.f32 %v2013_v41, %v2012_v34  ;;  %v2036_v43 = vadd.f32 %v2035_v42, %v2034_v35  ;;  %v2015_v44 = vpop.f32.mrb[10].mxu0  ;;  %v2037_v45 = vpop.f32.mrb[10].mxu1 }
 0x342   :  { %v2016_v46 = vpop.f32.mrb[11].mxu0  ;;  %v2038_v47 = vpop.f32.mrb[11].mxu1 }
 0x343   :  { %v1691_v48 = vadd.f32 %v2014_v29, %v1963_v39  ;;  %v2017_v49 = vadd.f32 %v2016_v46, %v2015_v44  ;;  %v2039_v50 = vadd.f32 %v2038_v47, %v2037_v45 }
 0x345   :  { %v1732_v51 = vadd.f32 %v2036_v43, %v1691_v48  ;;  %v1694_v52 = vadd.f32 %v2017_v49, %v1963_v39 }
 0x347   :  { %v1744_v53 = vand.u32 2147483647, %v1732_v51  ;;  %v1735_v55 = vadd.f32 %v2039_v50, %v1694_v52  ;;  %v1738_v38 = vmax.f32 %v1732_v51, 0.0  ;;  %vm1740_vm2 = vcmp.ne.f32.partialorder %v1732_v51, %v1732_v51 }
 0x349   :  { %v1746_v57 = vsub.f32 0.0, %v1744_v53  ;;  %v1745_v58 = vand.u32 2147483647, %v1735_v55  ;;  %v1739_v40 = vmax.f32 %v1735_v55, 0.0  ;;  %vm1741_vm4 = vcmp.ne.f32.partialorder %v1735_v55, %v1735_v55 }
 0x34b   :  { %v1748_v59 = vmul.f32 1.442695, %v1746_v57  ;;  %v1747_v60 = vsub.f32 0.0, %v1745_v58 }
 0x34d   :  { %2341 = vpow2.f32 %v1748_v59  ;;  %v1750_v61 = vmul.f32 1.442695, %v1747_v60 }
 0x34f   :  { %2343 = vpow2.f32 %v1750_v61 }
 0x357   :  { %v2342_v62 = vpop.eup %2341 }
 0x358   :  { %v1752_v63 = vadd.f32 1.0, %v2342_v62  ;;  %v1755_v2 = vmul.f32 -0.5, %v2342_v62  ;;  %v1758_v5 = vand.u32 2147483647, %v2342_v62 }
 0x359   :  { %v2344_v0 = vpop.eup %2343 }
 0x35a   :  { %2345 = vlog2.f32 %v1752_v63  ;;  %v1761_v1 = vadd.f32 1.0, %v2344_v0  ;;  %v1764_v3 = vmul.f32 -0.5, %v2344_v0  ;;  %v1756_v4 = vadd.f32 1.0, %v1755_v2 }
 0x35b   :  { %v1767_v8 = vand.u32 2147483647, %v2344_v0  ;;  %vm1759_vm0 = vcmp.lt.f32.partialorder %v1758_v5, 0.0004427343 }
 0x35c   :  { %2347 = vlog2.f32 %v1761_v1  ;;  %v1765_v6 = vadd.f32 1.0, %v1764_v3  ;;  %v1757_v10 = vmul.f32 %v2342_v62, %v1756_v4 }
 0x35d   :  { %vm1768_vm1 = vcmp.lt.f32.partialorder %v1767_v8, 0.0004427343 }
 0x35e   :  { %v1766_v14 = vmul.f32 %v2344_v0, %v1765_v6 }
 0x364   :  { %v2346_v7 = vpop.eup %2345 }
 0x365   :  { %v1754_v9 = vmul.f32 0.6931472, %v2346_v7 }
 0x366   :  { %v2348_v11 = vpop.eup %2347 }
 0x367   :  { %v1760_v13 = vsel %vm1759_vm0, %v1757_v10, %v1754_v9  ;;  %v1763_v54 = vmul.f32 0.6931472, %v2348_v11 }
 0x368   :  { %v1770_v15 = vadd.f32 %v1760_v13, %v1738_v38 }
 0x369   :  { %v1769_v16 = vsel %vm1768_vm1, %v1766_v14, %v1763_v54 }
 0x36a   :  { %v1771_v37 = vadd.f32 %v1769_v16, %v1739_v40  ;;  %v1772_v56 = vsel %vm1740_vm2, %v1732_v51, %v1770_v15 }
 0x36b   :  { %v1774_v17 = vadd.f32 1e-07, %v1772_v56 }
 0x36c   :  { %v1773_v18 = vsel %vm1741_vm4, %v1735_v55, %v1771_v37 }
 0x36d   :  { %v1775_v19 = vadd.f32 1e-07, %v1773_v18  ;;  %v1779_v20 = vsel %vm1778_vm3, %v1732_v51, %v1774_v17 }
 0x36e   :  { %1781 = vst [vmem:[#allocation10] sm:$0xff] %v1779_v20 }
 0x36f   :  { %v1780_v36 = vsel %vm1778_vm3, %v1735_v55, %v1775_v19 }
 0x370   :  { %1782 = vst [vmem:[#allocation10 + $0x8] sm:$0xff] %v1780_v36 }
 0x371   :  { %2448 = shalt.err (!%p2445_p8)
}
 0x372   :  { %s2449_s10 = scalar_lea.hbm %s2642_s7, 256 }
 0x373   :  { %p2450_p9 = scmp.ne.s32.totalorder %s2642_s7, %s2449_s10  ;;  %p2453_p10 = scmp.lt.u32.totalorder %s2449_s10, %s2642_s7 }
 0x375   :  { %p2455_p11 = pnand %p2453_p10, %p2450_p9 }
 0x377   :  { %2458 = shalt.err (!%p2455_p11)
}
 0x378   :  { %s2477_s18 = smov 128   ;;  %s2478_s0 = smov 8  }
 0x379   :  { %1794 = dma.vmem_to_hbm [thread:$0]  %s1789_s29, 256, %s2642_s7, [#allocation4], %s2477_s18, %s2477_s18, %s2478_s0  }
 0x37a   :  { %2465 = dma.done.wait [#allocation4], 256  }
 0x37b   :  { %2466 = vsyncadd [#allocation4], 4294967040 }
 0x37c   :  { %1798 = vsyncpa [#allocation3], 1 }
 0x37d   :  { %1799 = vsyncpa [#allocation6], 1 }
 0x37e   :  { %1800 = vsyncpa [#allocation9], 1 }
 0x37f   :  { %1801 = vsyncpa [#allocation4], 1 }

</bundles_post_ra>
